<compile_context>
chip_gen: v6e
topology: v6e:2x2x1
jax: 0.10.0
libtpu: 0.0.40
codegen_flags: <defaults>
</compile_context>

<pallas_src>
import jax
import jax.numpy as jnp
from jax.experimental import pallas as pl
from jax.experimental.pallas import tpu as pltpu

BF16 = jnp.bfloat16
F32 = jnp.float32


def make_rfca(B, C, OUP, H, W, K, reduction=32):
    assert K % 2 == 1, "odd kernel size (stride=1 path)"
    K2 = K * K
    MIP = max(8, C // reduction)
    PAD = K // 2
    HW = H * W
    CK, CK2 = C * K, C * K2

    eyeK = jnp.eye(K, dtype=F32)
    # Constant 0/1 selection matrices (exact in bf16): pooling and a_h/a_w broadcast as matmuls.
    EH = jnp.kron(jnp.eye(H, dtype=F32), jnp.ones((1, W), F32))   # (H, HW)   EH[h, h*W+w] = 1
    EW = jnp.kron(jnp.ones((1, H), F32), jnp.eye(W, dtype=F32))   # (W, HW)   EW[w, h*W+w] = 1
    RH = jnp.kron(jnp.eye(C, dtype=F32),
                  jnp.kron(eyeK, jnp.ones((K, 1), F32)))          # (CK2, CK) row c*K2+n1*K+n2 -> c*K+n1
    RW = jnp.kron(jnp.eye(C, dtype=F32),
                  jnp.kron(jnp.ones((K, 1), F32), eyeK))          # (CK2, CK) row c*K2+n1*K+n2 -> c*K+n2
    SUMW, SUMH = EH.T, EW.T                                       # (HW, H) sum over w, (HW, W) sum over h
    PH, PW = RH.T, RW.T                                           # (CK, CK2) sum over n2 / over n1
    consts = tuple(a.astype(BF16) for a in (SUMW, SUMH, PH, PW, RH, RW, EH, EW))

    def rfca_kernel(patch_ref, wg_ref, w1kh_ref, w1kw_ref, b1k_ref,
                    whk_ref, bhk_ref, wwk_ref, bwk_ref, wc_ref, bc_ref,
                    sumw_ref, sumh_ref, ph_ref, pw_ref, rh_ref, rw_ref,
                    eh_ref, ew_ref, out_ref):
        def mm(a, b):  # single-pass bf16 MXU dot, f32 accumulation
            return jnp.dot(a.astype(BF16), b.astype(BF16),
                           preferred_element_type=jnp.float32)

        patches = patch_ref[0]                               # (CK2+1, HW) bf16, last row = ones
        # depthwise "generate" conv (block-diag) + folded BN (bias = last wg column) + ReLU
        gf = jnp.maximum(mm(wg_ref[...], patches), 0.0)      # (CK2, HW) f32
        gfb = gf.astype(BF16)

        # coordinate-attention adaptive-avg pools (1/(K*W), 1/(K*H) folded into w1k_h / w1k_w)
        xh = mm(ph_ref[...], mm(gfb, sumw_ref[...]))         # (CK, H)  [c*K+n1, h]
        xw = mm(pw_ref[...], mm(gfb, sumh_ref[...]))         # (CK, W)  [c*K+n2, w]

        # shared 1x1 conv (+folded BN) + h_swish, applied per branch (no concat/split)
        th = mm(w1kh_ref[...], xh) + b1k_ref[...]            # (MIP*K, H)
        th = th * jnp.clip(th + 3.0, 0.0, 6.0) * (1.0 / 6.0)
        tw = mm(w1kw_ref[...], xw) + b1k_ref[...]            # (MIP*K, W)
        tw = tw * jnp.clip(tw + 3.0, 0.0, 6.0) * (1.0 / 6.0)
        a_h = jax.nn.sigmoid(mm(whk_ref[...], th) + bhk_ref[...])   # (CK, H)
        a_w = jax.nn.sigmoid(mm(wwk_ref[...], tw) + bwk_ref[...])   # (CK, W)

        # broadcast the gates over (n2, w) / (n1, h) via cheap single-pass bf16 0/1 matmuls
        ah_full = mm(mm(rh_ref[...], a_h), eh_ref[...])      # (CK2, HW)
        aw_full = mm(mm(rw_ref[...], a_w), ew_ref[...])      # (CK2, HW)
        mod = gf * ah_full * aw_full                          # (CK2, HW) on the VPU

        # final KxK / stride-K conv as one lane-dense dot
        out_ref[0, :, :] = mm(wc_ref[...], mod) + bc_ref[...]   # (OUP, HW)

    def run(patches, wg, w1kh, w1kw, b1k, whk, bhk, wwk, bwk, wc, bc):
        others = (wg, w1kh, w1kw, b1k, whk, bhk, wwk, bwk, wc, bc) + consts
        in_specs = [pl.BlockSpec((1, CK2 + 1, HW), lambda b: (b, 0, 0))]
        in_specs += [pl.BlockSpec(a.shape, lambda b, n=a.ndim: (0,) * n) for a in others]
        return pl.pallas_call(
            rfca_kernel,
            out_shape=jax.ShapeDtypeStruct((B, OUP, HW), jnp.float32),
            grid=(B,),
            in_specs=in_specs,
            out_specs=pl.BlockSpec((1, OUP, HW), lambda b: (b, 0, 0)),
            compiler_params=pltpu.CompilerParams(dimension_semantics=("parallel",)),
        )(patches, *others)

    def forward(x, p):
        eps = 1e-5
        # ---- fold inference-mode BN into the convs; build bf16 operands (plain-JAX glue) ----
        sg = p["gamma_g"] / jnp.sqrt(p["var_g"] + eps)                       # (C*K2,)
        wg_blk = (p["w_gen"] * sg.reshape(C, K2, 1, 1)).reshape(C, K2, K2)   # per-channel (K2,K2)
        bg = p["beta_g"] - p["mean_g"] * sg                                  # (C*K2,)
        wg_bd = (wg_blk[:, :, None, :] *
                 jnp.eye(C, dtype=F32)[:, None, :, None]).reshape(CK2, CK2)  # block-diagonal
        wg = jnp.concatenate([wg_bd, bg[:, None]], axis=1).astype(BF16)      # (CK2, CK2+1)

        s1 = p["gamma1"] / jnp.sqrt(p["var1"] + eps)
        w1_eff = p["w1"] * s1[:, None]
        b1_eff = s1 * (p["b1"] - p["mean1"]) + p["beta1"]
        # Kronecker expansion: SE runs batched over the K phases; pooling scales folded in.
        w1k = jnp.kron(w1_eff, eyeK)                                         # (MIP*K, CK)
        w1kh = (w1k * (1.0 / (K * W))).astype(BF16)
        w1kw = (w1k * (1.0 / (K * H))).astype(BF16)
        b1k = jnp.repeat(b1_eff, K)[:, None]                                 # (MIP*K, 1) f32
        whk = jnp.kron(p["wh"], eyeK).astype(BF16)                           # (CK, MIP*K)
        bhk = jnp.repeat(p["bh"], K)[:, None]
        wwk = jnp.kron(p["ww"], eyeK).astype(BF16)
        bwk = jnp.repeat(p["bw"], K)[:, None]
        wc = p["wc"].reshape(OUP, CK2).astype(BF16)
        bc = p["bc"][:, None]

        # ---- lane-dense im2col in the wrapper: (B, C*K2+1, H*W), last row = ones ----
        xpad = jnp.pad(x, ((0, 0), (0, 0), (PAD, PAD), (PAD, PAD)))
        taps = [xpad[:, :, ky:ky + H, kx:kx + W] for ky in range(K) for kx in range(K)]
        patches = jnp.stack(taps, axis=2).reshape(B, CK2, HW)
        patches = jnp.concatenate([patches, jnp.ones((B, 1, HW), F32)], axis=1).astype(BF16)

        out = run(patches, wg, w1kh, w1kw, b1k, whk, bhk, wwk, bwk, wc, bc)
        return out.reshape(B, OUP, H, W)

    return forward


def reference_forward(x, p, K):
    """Pure-JAX f32 reference mirroring the PyTorch forward (inference-mode BN)."""
    eps = 1e-5
    B, C, H, W = x.shape
    K2 = K * K
    HIGH = jax.lax.Precision.HIGHEST
    w = p["w_gen"].reshape(C * K2, 1, K, K)
    y = jax.lax.conv_general_dilated(
        x, w, window_strides=(1, 1), padding=[(K // 2, K // 2)] * 2,
        dimension_numbers=("NCHW", "OIHW", "NCHW"),
        feature_group_count=C, precision=HIGH)
    y = (y - p["mean_g"].reshape(1, -1, 1, 1)) / jnp.sqrt(p["var_g"].reshape(1, -1, 1, 1) + eps)
    y = y * p["gamma_g"].reshape(1, -1, 1, 1) + p["beta_g"].reshape(1, -1, 1, 1)
    gen = jax.nn.relu(y)
    gen = gen.reshape(B, C, K, K, H, W).transpose(0, 1, 4, 2, 5, 3).reshape(B, C, H * K, W * K)
    x_h = gen.mean(axis=3, keepdims=True)                            # (B,C,HK,1)
    x_w = gen.mean(axis=2, keepdims=True).transpose(0, 1, 3, 2)      # (B,C,WK,1)
    yy = jnp.concatenate([x_h, x_w], axis=2)
    yy = jnp.einsum("mc,bcld->bmld", p["w1"], yy, precision=HIGH) + p["b1"].reshape(1, -1, 1, 1)
    yy = (yy - p["mean1"].reshape(1, -1, 1, 1)) / jnp.sqrt(p["var1"].reshape(1, -1, 1, 1) + eps)
    yy = yy * p["gamma1"].reshape(1, -1, 1, 1) + p["beta1"].reshape(1, -1, 1, 1)
    yy = yy * jnp.clip(yy + 3.0, 0.0, 6.0) / 6.0                     # h_swish
    xh2, xw2 = yy[:, :, :H * K], yy[:, :, H * K:]
    xw2 = xw2.transpose(0, 1, 3, 2)
    a_h = jax.nn.sigmoid(jnp.einsum("cm,bmld->bcld", p["wh"], xh2, precision=HIGH)
                         + p["bh"].reshape(1, -1, 1, 1))
    a_w = jax.nn.sigmoid(jnp.einsum("cm,bmld->bcld", p["ww"], xw2, precision=HIGH)
                         + p["bw"].reshape(1, -1, 1, 1))
    feat = gen * a_w * a_h
    out = jax.lax.conv_general_dilated(
        feat, p["wc"], window_strides=(K, K), padding="VALID",
        dimension_numbers=("NCHW", "OIHW", "NCHW"), precision=HIGH)
    return out + p["bc"].reshape(1, -1, 1, 1)


if __name__ == "__main__":
    B, C, OUP, H, W, K = 2, 4, 8, 16, 16, 3
    K2 = K * K
    MIP = max(8, C // 32)
    ks = jax.random.split(jax.random.PRNGKey(0), 18)
    params = dict(
        w_gen=0.2 * jax.random.normal(ks[0], (C, K2, K, K), F32),
        gamma_g=1.0 + 0.1 * jax.random.normal(ks[1], (C * K2,), F32),
        beta_g=0.1 * jax.random.normal(ks[2], (C * K2,), F32),
        mean_g=0.05 * jax.random.normal(ks[3], (C * K2,), F32),
        var_g=1.0 + 0.1 * jnp.abs(jax.random.normal(ks[4], (C * K2,), F32)),
        w1=0.3 * jax.random.normal(ks[5], (MIP, C), F32),
        b1=0.1 * jax.random.normal(ks[6], (MIP,), F32),
        gamma1=1.0 + 0.1 * jax.random.normal(ks[7], (MIP,), F32),
        beta1=0.1 * jax.random.normal(ks[8], (MIP,), F32),
        mean1=0.05 * jax.random.normal(ks[9], (MIP,), F32),
        var1=1.0 + 0.1 * jnp.abs(jax.random.normal(ks[10], (MIP,), F32)),
        wh=0.3 * jax.random.normal(ks[11], (C, MIP), F32),
        bh=0.1 * jax.random.normal(ks[12], (C,), F32),
        ww=0.3 * jax.random.normal(ks[13], (C, MIP), F32),
        bw=0.1 * jax.random.normal(ks[14], (C,), F32),
        wc=0.2 * jax.random.normal(ks[15], (OUP, C, K, K), F32),
        bc=0.1 * jax.random.normal(ks[16], (OUP,), F32),
    )
    x = jax.random.normal(ks[17], (B, C, H, W), F32)

    fwd = make_rfca(B, C, OUP, H, W, K)
    out = jax.block_until_ready(fwd(x, params))
    ref = jax.block_until_ready(reference_forward(x, params, K))

    assert out.shape == (B, OUP, H, W), out.shape
    err = float(jnp.max(jnp.abs(out - ref)))
    # bf16 MXU operands with f32 accumulation -> relaxed tolerance vs the f32 reference.
    assert err < 5e-2, f"max abs err {err}"
    print("KERNEL_OK")
</pallas_src>

<mosaic_0001>
module attributes {stable_mosaic.version = 11 : i64} {
  func.func @rfca_kernel(%arg0: i32, %arg1: memref<1x37x256xbf16, #tpu.memory_space<vmem>>, %arg2: memref<36x37xbf16, #tpu.memory_space<vmem>>, %arg3: memref<24x12xbf16, #tpu.memory_space<vmem>>, %arg4: memref<24x12xbf16, #tpu.memory_space<vmem>>, %arg5: memref<24x1xf32, #tpu.memory_space<vmem>>, %arg6: memref<12x24xbf16, #tpu.memory_space<vmem>>, %arg7: memref<12x1xf32, #tpu.memory_space<vmem>>, %arg8: memref<12x24xbf16, #tpu.memory_space<vmem>>, %arg9: memref<12x1xf32, #tpu.memory_space<vmem>>, %arg10: memref<8x36xbf16, #tpu.memory_space<vmem>>, %arg11: memref<8x1xf32, #tpu.memory_space<vmem>>, %arg12: memref<256x16xbf16, #tpu.memory_space<vmem>>, %arg13: memref<256x16xbf16, #tpu.memory_space<vmem>>, %arg14: memref<12x36xbf16, #tpu.memory_space<vmem>>, %arg15: memref<12x36xbf16, #tpu.memory_space<vmem>>, %arg16: memref<36x12xbf16, #tpu.memory_space<vmem>>, %arg17: memref<36x12xbf16, #tpu.memory_space<vmem>>, %arg18: memref<16x256xbf16, #tpu.memory_space<vmem>>, %arg19: memref<16x256xbf16, #tpu.memory_space<vmem>>, %arg20: memref<1x8x256xf32, #tpu.memory_space<vmem>>) attributes {dimension_semantics = [#tpu.dimension_semantics<parallel>], iteration_bounds = array<i64: 2>, scalar_prefetch = 0 : i64, scratch_operands = 0 : i64, tpu.core_type = #tpu.core_type<tc>, window_params = [{transform_indices = @transform_0, window_bounds = array<i64: 1, 37, 256>}, {pipeline_mode = #tpu.pipeline_mode<synchronous>, transform_indices = @transform_1, window_bounds = array<i64: 36, 37>}, {pipeline_mode = #tpu.pipeline_mode<synchronous>, transform_indices = @transform_2, window_bounds = array<i64: 24, 12>}, {pipeline_mode = #tpu.pipeline_mode<synchronous>, transform_indices = @transform_3, window_bounds = array<i64: 24, 12>}, {pipeline_mode = #tpu.pipeline_mode<synchronous>, transform_indices = @transform_4, window_bounds = array<i64: 24, 1>}, {pipeline_mode = #tpu.pipeline_mode<synchronous>, transform_indices = @transform_5, window_bounds = array<i64: 12, 24>}, {pipeline_mode = #tpu.pipeline_mode<synchronous>, transform_indices = @transform_6, window_bounds = array<i64: 12, 1>}, {pipeline_mode = #tpu.pipeline_mode<synchronous>, transform_indices = @transform_7, window_bounds = array<i64: 12, 24>}, {pipeline_mode = #tpu.pipeline_mode<synchronous>, transform_indices = @transform_8, window_bounds = array<i64: 12, 1>}, {pipeline_mode = #tpu.pipeline_mode<synchronous>, transform_indices = @transform_9, window_bounds = array<i64: 8, 36>}, {pipeline_mode = #tpu.pipeline_mode<synchronous>, transform_indices = @transform_10, window_bounds = array<i64: 8, 1>}, {pipeline_mode = #tpu.pipeline_mode<synchronous>, transform_indices = @transform_11, window_bounds = array<i64: 256, 16>}, {pipeline_mode = #tpu.pipeline_mode<synchronous>, transform_indices = @transform_12, window_bounds = array<i64: 256, 16>}, {pipeline_mode = #tpu.pipeline_mode<synchronous>, transform_indices = @transform_13, window_bounds = array<i64: 12, 36>}, {pipeline_mode = #tpu.pipeline_mode<synchronous>, transform_indices = @transform_14, window_bounds = array<i64: 12, 36>}, {pipeline_mode = #tpu.pipeline_mode<synchronous>, transform_indices = @transform_15, window_bounds = array<i64: 36, 12>}, {pipeline_mode = #tpu.pipeline_mode<synchronous>, transform_indices = @transform_16, window_bounds = array<i64: 36, 12>}, {pipeline_mode = #tpu.pipeline_mode<synchronous>, transform_indices = @transform_17, window_bounds = array<i64: 16, 256>}, {pipeline_mode = #tpu.pipeline_mode<synchronous>, transform_indices = @transform_18, window_bounds = array<i64: 16, 256>}, {transform_indices = @transform_19, window_bounds = array<i64: 1, 8, 256>}]} {
    %c0 = arith.constant 0 : index
    %c0_0 = arith.constant 0 : index
    %c0_1 = arith.constant 0 : index
    %0 = vector.load %arg1[%c0, %c0_0, %c0_1] : memref<1x37x256xbf16, #tpu.memory_space<vmem>>, vector<1x37x256xbf16>
    %1 = vector.shape_cast %0 : vector<1x37x256xbf16> to vector<37x256xbf16>
    %c0_2 = arith.constant 0 : index
    %c0_3 = arith.constant 0 : index
    %2 = vector.load %arg2[%c0_2, %c0_3] : memref<36x37xbf16, #tpu.memory_space<vmem>>, vector<36x37xbf16>
    %cst = arith.constant dense<0.000000e+00> : vector<36x256xf32>
    %3 = tpu.matmul %2, %1, %cst {dimension_numbers = #tpu.dot_dimension_numbers<[1], [0], [0], [1], [0, 0, 1, 1], [], []>} : vector<36x37xbf16>, vector<37x256xbf16>, vector<36x256xf32> -> vector<36x256xf32>
    %cst_4 = arith.constant 0.000000e+00 : f32
    %4 = vector.broadcast %cst_4 : f32 to vector<36x256xf32>
    %5 = arith.maximumf %3, %4 : vector<36x256xf32>
    %6 = arith.truncf %5 : vector<36x256xf32> to vector<36x256xbf16>
    %c0_5 = arith.constant 0 : index
    %c0_6 = arith.constant 0 : index
    %7 = vector.load %arg14[%c0_5, %c0_6] : memref<12x36xbf16, #tpu.memory_space<vmem>>, vector<12x36xbf16>
    %c0_7 = arith.constant 0 : index
    %c0_8 = arith.constant 0 : index
    %8 = vector.load %arg12[%c0_7, %c0_8] : memref<256x16xbf16, #tpu.memory_space<vmem>>, vector<256x16xbf16>
    %cst_9 = arith.constant dense<0.000000e+00> : vector<36x16xf32>
    %9 = tpu.matmul %6, %8, %cst_9 {dimension_numbers = #tpu.dot_dimension_numbers<[1], [0], [0], [1], [0, 0, 1, 1], [], []>} : vector<36x256xbf16>, vector<256x16xbf16>, vector<36x16xf32> -> vector<36x16xf32>
    %10 = arith.truncf %9 : vector<36x16xf32> to vector<36x16xbf16>
    %cst_10 = arith.constant dense<0.000000e+00> : vector<12x16xf32>
    %11 = tpu.matmul %7, %10, %cst_10 {dimension_numbers = #tpu.dot_dimension_numbers<[1], [0], [0], [1], [0, 0, 1, 1], [], []>} : vector<12x36xbf16>, vector<36x16xbf16>, vector<12x16xf32> -> vector<12x16xf32>
    %c0_11 = arith.constant 0 : index
    %c0_12 = arith.constant 0 : index
    %12 = vector.load %arg15[%c0_11, %c0_12] : memref<12x36xbf16, #tpu.memory_space<vmem>>, vector<12x36xbf16>
    %c0_13 = arith.constant 0 : index
    %c0_14 = arith.constant 0 : index
    %13 = vector.load %arg13[%c0_13, %c0_14] : memref<256x16xbf16, #tpu.memory_space<vmem>>, vector<256x16xbf16>
    %cst_15 = arith.constant dense<0.000000e+00> : vector<36x16xf32>
    %14 = tpu.matmul %6, %13, %cst_15 {dimension_numbers = #tpu.dot_dimension_numbers<[1], [0], [0], [1], [0, 0, 1, 1], [], []>} : vector<36x256xbf16>, vector<256x16xbf16>, vector<36x16xf32> -> vector<36x16xf32>
    %15 = arith.truncf %14 : vector<36x16xf32> to vector<36x16xbf16>
    %cst_16 = arith.constant dense<0.000000e+00> : vector<12x16xf32>
    %16 = tpu.matmul %12, %15, %cst_16 {dimension_numbers = #tpu.dot_dimension_numbers<[1], [0], [0], [1], [0, 0, 1, 1], [], []>} : vector<12x36xbf16>, vector<36x16xbf16>, vector<12x16xf32> -> vector<12x16xf32>
    %c0_17 = arith.constant 0 : index
    %c0_18 = arith.constant 0 : index
    %17 = vector.load %arg3[%c0_17, %c0_18] : memref<24x12xbf16, #tpu.memory_space<vmem>>, vector<24x12xbf16>
    %18 = arith.truncf %11 : vector<12x16xf32> to vector<12x16xbf16>
    %cst_19 = arith.constant dense<0.000000e+00> : vector<24x16xf32>
    %19 = tpu.matmul %17, %18, %cst_19 {dimension_numbers = #tpu.dot_dimension_numbers<[1], [0], [0], [1], [0, 0, 1, 1], [], []>} : vector<24x12xbf16>, vector<12x16xbf16>, vector<24x16xf32> -> vector<24x16xf32>
    %c0_20 = arith.constant 0 : index
    %c0_21 = arith.constant 0 : index
    %20 = vector.load %arg5[%c0_20, %c0_21] : memref<24x1xf32, #tpu.memory_space<vmem>>, vector<24x1xf32>
    %21 = vector.broadcast %20 : vector<24x1xf32> to vector<24x16xf32>
    %22 = arith.addf %19, %21 : vector<24x16xf32>
    %cst_22 = arith.constant 3.000000e+00 : f32
    %23 = vector.broadcast %cst_22 : f32 to vector<24x16xf32>
    %24 = arith.addf %22, %23 : vector<24x16xf32>
    %cst_23 = arith.constant 0.000000e+00 : f32
    %cst_24 = arith.constant 6.000000e+00 : f32
    %25 = vector.broadcast %cst_23 : f32 to vector<24x16xf32>
    %26 = arith.maximumf %25, %24 : vector<24x16xf32>
    %27 = vector.broadcast %cst_24 : f32 to vector<24x16xf32>
    %28 = arith.minimumf %27, %26 : vector<24x16xf32>
    %29 = arith.mulf %22, %28 : vector<24x16xf32>
    %cst_25 = arith.constant 0.166666672 : f32
    %30 = vector.broadcast %cst_25 : f32 to vector<24x16xf32>
    %31 = arith.mulf %29, %30 : vector<24x16xf32>
    %c0_26 = arith.constant 0 : index
    %c0_27 = arith.constant 0 : index
    %32 = vector.load %arg4[%c0_26, %c0_27] : memref<24x12xbf16, #tpu.memory_space<vmem>>, vector<24x12xbf16>
    %33 = arith.truncf %16 : vector<12x16xf32> to vector<12x16xbf16>
    %cst_28 = arith.constant dense<0.000000e+00> : vector<24x16xf32>
    %34 = tpu.matmul %32, %33, %cst_28 {dimension_numbers = #tpu.dot_dimension_numbers<[1], [0], [0], [1], [0, 0, 1, 1], [], []>} : vector<24x12xbf16>, vector<12x16xbf16>, vector<24x16xf32> -> vector<24x16xf32>
    %c0_29 = arith.constant 0 : index
    %c0_30 = arith.constant 0 : index
    %35 = vector.load %arg5[%c0_29, %c0_30] : memref<24x1xf32, #tpu.memory_space<vmem>>, vector<24x1xf32>
    %36 = vector.broadcast %35 : vector<24x1xf32> to vector<24x16xf32>
    %37 = arith.addf %34, %36 : vector<24x16xf32>
    %cst_31 = arith.constant 3.000000e+00 : f32
    %38 = vector.broadcast %cst_31 : f32 to vector<24x16xf32>
    %39 = arith.addf %37, %38 : vector<24x16xf32>
    %cst_32 = arith.constant 0.000000e+00 : f32
    %cst_33 = arith.constant 6.000000e+00 : f32
    %40 = vector.broadcast %cst_32 : f32 to vector<24x16xf32>
    %41 = arith.maximumf %40, %39 : vector<24x16xf32>
    %42 = vector.broadcast %cst_33 : f32 to vector<24x16xf32>
    %43 = arith.minimumf %42, %41 : vector<24x16xf32>
    %44 = arith.mulf %37, %43 : vector<24x16xf32>
    %cst_34 = arith.constant 0.166666672 : f32
    %45 = vector.broadcast %cst_34 : f32 to vector<24x16xf32>
    %46 = arith.mulf %44, %45 : vector<24x16xf32>
    %c0_35 = arith.constant 0 : index
    %c0_36 = arith.constant 0 : index
    %47 = vector.load %arg6[%c0_35, %c0_36] : memref<12x24xbf16, #tpu.memory_space<vmem>>, vector<12x24xbf16>
    %48 = arith.truncf %31 : vector<24x16xf32> to vector<24x16xbf16>
    %cst_37 = arith.constant dense<0.000000e+00> : vector<12x16xf32>
    %49 = tpu.matmul %47, %48, %cst_37 {dimension_numbers = #tpu.dot_dimension_numbers<[1], [0], [0], [1], [0, 0, 1, 1], [], []>} : vector<12x24xbf16>, vector<24x16xbf16>, vector<12x16xf32> -> vector<12x16xf32>
    %c0_38 = arith.constant 0 : index
    %c0_39 = arith.constant 0 : index
    %50 = vector.load %arg7[%c0_38, %c0_39] : memref<12x1xf32, #tpu.memory_space<vmem>>, vector<12x1xf32>
    %51 = vector.broadcast %50 : vector<12x1xf32> to vector<12x16xf32>
    %52 = arith.addf %49, %51 : vector<12x16xf32>
    %53 = arith.negf %52 : vector<12x16xf32>
    %54 = math.exp %53 : vector<12x16xf32>
    %cst_40 = arith.constant 1.000000e+00 : f32
    %55 = vector.broadcast %cst_40 : f32 to vector<12x16xf32>
    %56 = arith.addf %55, %54 : vector<12x16xf32>
    %57 = arith.divf %55, %56 : vector<12x16xf32>
    %c0_41 = arith.constant 0 : index
    %c0_42 = arith.constant 0 : index
    %58 = vector.load %arg8[%c0_41, %c0_42] : memref<12x24xbf16, #tpu.memory_space<vmem>>, vector<12x24xbf16>
    %59 = arith.truncf %46 : vector<24x16xf32> to vector<24x16xbf16>
    %cst_43 = arith.constant dense<0.000000e+00> : vector<12x16xf32>
    %60 = tpu.matmul %58, %59, %cst_43 {dimension_numbers = #tpu.dot_dimension_numbers<[1], [0], [0], [1], [0, 0, 1, 1], [], []>} : vector<12x24xbf16>, vector<24x16xbf16>, vector<12x16xf32> -> vector<12x16xf32>
    %c0_44 = arith.constant 0 : index
    %c0_45 = arith.constant 0 : index
    %61 = vector.load %arg9[%c0_44, %c0_45] : memref<12x1xf32, #tpu.memory_space<vmem>>, vector<12x1xf32>
    %62 = vector.broadcast %61 : vector<12x1xf32> to vector<12x16xf32>
    %63 = arith.addf %60, %62 : vector<12x16xf32>
    %64 = arith.negf %63 : vector<12x16xf32>
    %65 = math.exp %64 : vector<12x16xf32>
    %cst_46 = arith.constant 1.000000e+00 : f32
    %66 = vector.broadcast %cst_46 : f32 to vector<12x16xf32>
    %67 = arith.addf %66, %65 : vector<12x16xf32>
    %68 = arith.divf %66, %67 : vector<12x16xf32>
    %c0_47 = arith.constant 0 : index
    %c0_48 = arith.constant 0 : index
    %69 = vector.load %arg16[%c0_47, %c0_48] : memref<36x12xbf16, #tpu.memory_space<vmem>>, vector<36x12xbf16>
    %70 = arith.truncf %57 : vector<12x16xf32> to vector<12x16xbf16>
    %cst_49 = arith.constant dense<0.000000e+00> : vector<36x16xf32>
    %71 = tpu.matmul %69, %70, %cst_49 {dimension_numbers = #tpu.dot_dimension_numbers<[1], [0], [0], [1], [0, 0, 1, 1], [], []>} : vector<36x12xbf16>, vector<12x16xbf16>, vector<36x16xf32> -> vector<36x16xf32>
    %c0_50 = arith.constant 0 : index
    %c0_51 = arith.constant 0 : index
    %72 = vector.load %arg18[%c0_50, %c0_51] : memref<16x256xbf16, #tpu.memory_space<vmem>>, vector<16x256xbf16>
    %73 = arith.truncf %71 : vector<36x16xf32> to vector<36x16xbf16>
    %cst_52 = arith.constant dense<0.000000e+00> : vector<36x256xf32>
    %74 = tpu.matmul %73, %72, %cst_52 {dimension_numbers = #tpu.dot_dimension_numbers<[1], [0], [0], [1], [0, 0, 1, 1], [], []>} : vector<36x16xbf16>, vector<16x256xbf16>, vector<36x256xf32> -> vector<36x256xf32>
    %c0_53 = arith.constant 0 : index
    %c0_54 = arith.constant 0 : index
    %75 = vector.load %arg17[%c0_53, %c0_54] : memref<36x12xbf16, #tpu.memory_space<vmem>>, vector<36x12xbf16>
    %76 = arith.truncf %68 : vector<12x16xf32> to vector<12x16xbf16>
    %cst_55 = arith.constant dense<0.000000e+00> : vector<36x16xf32>
    %77 = tpu.matmul %75, %76, %cst_55 {dimension_numbers = #tpu.dot_dimension_numbers<[1], [0], [0], [1], [0, 0, 1, 1], [], []>} : vector<36x12xbf16>, vector<12x16xbf16>, vector<36x16xf32> -> vector<36x16xf32>
    %c0_56 = arith.constant 0 : index
    %c0_57 = arith.constant 0 : index
    %78 = vector.load %arg19[%c0_56, %c0_57] : memref<16x256xbf16, #tpu.memory_space<vmem>>, vector<16x256xbf16>
    %79 = arith.truncf %77 : vector<36x16xf32> to vector<36x16xbf16>
    %cst_58 = arith.constant dense<0.000000e+00> : vector<36x256xf32>
    %80 = tpu.matmul %79, %78, %cst_58 {dimension_numbers = #tpu.dot_dimension_numbers<[1], [0], [0], [1], [0, 0, 1, 1], [], []>} : vector<36x16xbf16>, vector<16x256xbf16>, vector<36x256xf32> -> vector<36x256xf32>
    %81 = arith.mulf %5, %74 : vector<36x256xf32>
    %82 = arith.mulf %81, %80 : vector<36x256xf32>
    %c0_59 = arith.constant 0 : index
    %c0_60 = arith.constant 0 : index
    %83 = vector.load %arg10[%c0_59, %c0_60] : memref<8x36xbf16, #tpu.memory_space<vmem>>, vector<8x36xbf16>
    %84 = arith.truncf %82 : vector<36x256xf32> to vector<36x256xbf16>
    %cst_61 = arith.constant dense<0.000000e+00> : vector<8x256xf32>
    %85 = tpu.matmul %83, %84, %cst_61 {dimension_numbers = #tpu.dot_dimension_numbers<[1], [0], [0], [1], [0, 0, 1, 1], [], []>} : vector<8x36xbf16>, vector<36x256xbf16>, vector<8x256xf32> -> vector<8x256xf32>
    %c0_62 = arith.constant 0 : index
    %c0_63 = arith.constant 0 : index
    %86 = vector.load %arg11[%c0_62, %c0_63] : memref<8x1xf32, #tpu.memory_space<vmem>>, vector<8x1xf32>
    %87 = vector.broadcast %86 : vector<8x1xf32> to vector<8x256xf32>
    %88 = arith.addf %85, %87 : vector<8x256xf32>
    %c0_64 = arith.constant 0 : index
    %c0_65 = arith.constant 0 : index
    %c0_66 = arith.constant 0 : index
    %89 = vector.load %arg20[%c0_64, %c0_65, %c0_66] : memref<1x8x256xf32, #tpu.memory_space<vmem>>, vector<1x8x256xf32>
    %90 = vector.shape_cast %89 : vector<1x8x256xf32> to vector<8x256xf32>
    %91 = vector.shape_cast %88 : vector<8x256xf32> to vector<1x8x256xf32>
    tpu.vector_store %arg20[%c0_64, %c0_65, %c0_66], %91 {strides = array<i32>} : memref<1x8x256xf32, #tpu.memory_space<vmem>>, vector<1x8x256xf32>,
    return
  }
  func.func @transform_0(%arg0: i32) -> (i32, i32, i32) {
    %c0_i32 = arith.constant 0 : i32
    %c0_i32_0 = arith.constant 0 : i32
    %c0_i32_1 = arith.constant 0 : i32
    return %arg0, %c0_i32, %c0_i32_0 : i32, i32, i32
  }
  func.func @transform_1(%arg0: i32) -> (i32, i32) {
    %c0_i32 = arith.constant 0 : i32
    %c0_i32_0 = arith.constant 0 : i32
    %c0_i32_1 = arith.constant 0 : i32
    return %c0_i32, %c0_i32_0 : i32, i32
  }
  func.func @transform_2(%arg0: i32) -> (i32, i32) {
    %c0_i32 = arith.constant 0 : i32
    %c0_i32_0 = arith.constant 0 : i32
    %c0_i32_1 = arith.constant 0 : i32
    return %c0_i32, %c0_i32_0 : i32, i32
  }
  func.func @transform_3(%arg0: i32) -> (i32, i32) {
    %c0_i32 = arith.constant 0 : i32
    %c0_i32_0 = arith.constant 0 : i32
    %c0_i32_1 = arith.constant 0 : i32
    return %c0_i32, %c0_i32_0 : i32, i32
  }
  func.func @transform_4(%arg0: i32) -> (i32, i32) {
    %c0_i32 = arith.constant 0 : i32
    %c0_i32_0 = arith.constant 0 : i32
    %c0_i32_1 = arith.constant 0 : i32
    return %c0_i32, %c0_i32_0 : i32, i32
  }
  func.func @transform_5(%arg0: i32) -> (i32, i32) {
    %c0_i32 = arith.constant 0 : i32
    %c0_i32_0 = arith.constant 0 : i32
    %c0_i32_1 = arith.constant 0 : i32
    return %c0_i32, %c0_i32_0 : i32, i32
  }
  func.func @transform_6(%arg0: i32) -> (i32, i32) {
    %c0_i32 = arith.constant 0 : i32
    %c0_i32_0 = arith.constant 0 : i32
    %c0_i32_1 = arith.constant 0 : i32
    return %c0_i32, %c0_i32_0 : i32, i32
  }
  func.func @transform_7(%arg0: i32) -> (i32, i32) {
    %c0_i32 = arith.constant 0 : i32
    %c0_i32_0 = arith.constant 0 : i32
    %c0_i32_1 = arith.constant 0 : i32
    return %c0_i32, %c0_i32_0 : i32, i32
  }
  func.func @transform_8(%arg0: i32) -> (i32, i32) {
    %c0_i32 = arith.constant 0 : i32
    %c0_i32_0 = arith.constant 0 : i32
    %c0_i32_1 = arith.constant 0 : i32
    return %c0_i32, %c0_i32_0 : i32, i32
  }
  func.func @transform_9(%arg0: i32) -> (i32, i32) {
    %c0_i32 = arith.constant 0 : i32
    %c0_i32_0 = arith.constant 0 : i32
    %c0_i32_1 = arith.constant 0 : i32
    return %c0_i32, %c0_i32_0 : i32, i32
  }
  func.func @transform_10(%arg0: i32) -> (i32, i32) {
    %c0_i32 = arith.constant 0 : i32
    %c0_i32_0 = arith.constant 0 : i32
    %c0_i32_1 = arith.constant 0 : i32
    return %c0_i32, %c0_i32_0 : i32, i32
  }
  func.func @transform_11(%arg0: i32) -> (i32, i32) {
    %c0_i32 = arith.constant 0 : i32
    %c0_i32_0 = arith.constant 0 : i32
    %c0_i32_1 = arith.constant 0 : i32
    return %c0_i32, %c0_i32_0 : i32, i32
  }
  func.func @transform_12(%arg0: i32) -> (i32, i32) {
    %c0_i32 = arith.constant 0 : i32
    %c0_i32_0 = arith.constant 0 : i32
    %c0_i32_1 = arith.constant 0 : i32
    return %c0_i32, %c0_i32_0 : i32, i32
  }
  func.func @transform_13(%arg0: i32) -> (i32, i32) {
    %c0_i32 = arith.constant 0 : i32
    %c0_i32_0 = arith.constant 0 : i32
    %c0_i32_1 = arith.constant 0 : i32
    return %c0_i32, %c0_i32_0 : i32, i32
  }
  func.func @transform_14(%arg0: i32) -> (i32, i32) {
    %c0_i32 = arith.constant 0 : i32
    %c0_i32_0 = arith.constant 0 : i32
    %c0_i32_1 = arith.constant 0 : i32
    return %c0_i32, %c0_i32_0 : i32, i32
  }
  func.func @transform_15(%arg0: i32) -> (i32, i32) {
    %c0_i32 = arith.constant 0 : i32
    %c0_i32_0 = arith.constant 0 : i32
    %c0_i32_1 = arith.constant 0 : i32
    return %c0_i32, %c0_i32_0 : i32, i32
  }
  func.func @transform_16(%arg0: i32) -> (i32, i32) {
    %c0_i32 = arith.constant 0 : i32
    %c0_i32_0 = arith.constant 0 : i32
    %c0_i32_1 = arith.constant 0 : i32
    return %c0_i32, %c0_i32_0 : i32, i32
  }
  func.func @transform_17(%arg0: i32) -> (i32, i32) {
    %c0_i32 = arith.constant 0 : i32
    %c0_i32_0 = arith.constant 0 : i32
    %c0_i32_1 = arith.constant 0 : i32
    return %c0_i32, %c0_i32_0 : i32, i32
  }
  func.func @transform_18(%arg0: i32) -> (i32, i32) {
    %c0_i32 = arith.constant 0 : i32
    %c0_i32_0 = arith.constant 0 : i32
    %c0_i32_1 = arith.constant 0 : i32
    return %c0_i32, %c0_i32_0 : i32, i32
  }
  func.func @transform_19(%arg0: i32) -> (i32, i32, i32) {
    %c0_i32 = arith.constant 0 : i32
    %c0_i32_0 = arith.constant 0 : i32
    %c0_i32_1 = arith.constant 0 : i32
    return %arg0, %c0_i32, %c0_i32_0 : i32, i32, i32
  }
}

</mosaic_0001>

<bundles_post_ra>
// kernel: tpu_custom_call.1
= control target key start
LH: loop header
LB: loop body
LE: loop exit
PB: predicated region body
PF: predicated region fallthrough
CT: control target
= control target key end

     0   :  { %s3082_s0 = inlined_call_operand.vmem [shape: bf16[2,37,256], index: 0, kind: input, shape index: {}]   ;;  %s3083_s1 = inlined_call_operand.vmem [shape: bf16[36,37], index: 1, kind: input, shape index: {}]   ;;  %s3084_s2 = inlined_call_operand.vmem [shape: bf16[24,12], index: 2, kind: input, shape index: {}]   ;;  %s3085_s3 = inlined_call_operand.vmem [shape: bf16[24,12], index: 3, kind: input, shape index: {}]   ;;  %s3086_s4 = inlined_call_operand.vmem [shape: f32[24,1], index: 4, kind: input, shape index: {}]   ;;  %s3087_s5 = inlined_call_operand.vmem [shape: bf16[12,24], index: 5, kind: input, shape index: {}]   ;;  %s3088_s6 = inlined_call_operand.vmem [shape: f32[12,1], index: 6, kind: input, shape index: {}]   ;;  %s3089_s7 = inlined_call_operand.vmem [shape: bf16[12,24], index: 7, kind: input, shape index: {}]   ;;  %s3090_s8 = inlined_call_operand.vmem [shape: f32[12,1], index: 8, kind: input, shape index: {}]   ;;  %s3091_s9 = inlined_call_operand.vmem [shape: bf16[8,36], index: 9, kind: input, shape index: {}]   ;;  %s3092_s10 = inlined_call_operand.vmem [shape: f32[8,1], index: 10, kind: input, shape index: {}]   ;;  %s3093_s11 = inlined_call_operand.vmem [shape: bf16[256,16], index: 11, kind: input, shape index: {}]   ;;  %s3094_s12 = inlined_call_operand.vmem [shape: bf16[256,16], index: 12, kind: input, shape index: {}]   ;;  %s3095_s13 = inlined_call_operand.vmem [shape: bf16[12,36], index: 13, kind: input, shape index: {}]   ;;  %s3096_s14 = inlined_call_operand.vmem [shape: bf16[12,36], index: 14, kind: input, shape index: {}]   ;;  %s3097_s15 = inlined_call_operand.vmem [shape: bf16[36,12], index: 15, kind: input, shape index: {}]   ;;  %s3098_s16 = inlined_call_operand.vmem [shape: bf16[36,12], index: 16, kind: input, shape index: {}]   ;;  %s3099_s17 = inlined_call_operand.vmem [shape: bf16[16,256], index: 17, kind: input, shape index: {}]   ;;  %s3100_s18 = inlined_call_operand.vmem [shape: bf16[16,256], index: 18, kind: input, shape index: {}]   ;;  %s3101_s19 = inlined_call_operand.hbm [shape: f32[2,8,256], index: 19, kind: output, shape index: {}]  }
   0x1   :  { %3112 = sst [smem:[#allocation11_spill]] %s3082_s0 }
   0x2   :  { %3113 = sst [smem:[#allocation12_spill]] %s3083_s1 }
   0x3   :  { %3114 = sst [smem:[#allocation13_spill]] %s3084_s2 }
   0x4   :  { %3115 = sst [smem:[#allocation14_spill]] %s3085_s3 }
   0x5   :  { %3116 = sst [smem:[#allocation15_spill]] %s3086_s4 }
   0x6   :  { %24 = vsyncpa [#allocation3], 0 }
   0x7   :  { %26 = vsyncpa [#allocation3 + $0x1], 0  ;;  %s2650_s0 = smov 0   ;;  %s2652_s30 = smov 0  }
   0x8   :  { %s2654_s20 = smov 0   ;;  %s2656_s21 = smov 0  }
   0x9 LB: > { %3117 = sst [smem:[#allocation5_spill]] %s2531_s0  ;;  %s2671_s1 = sadd.s32 4294967295, %s2543_s21   ;;  %s2543_s21 = sphi %s2656_s21, %s3134_s21   ;;  %s2539_s20 = sphi %s2654_s20, %s3136_s20   ;;  %s2535_s30 = sphi %s2652_s30, %s3138_s30   ;;  %s2531_s0 = sphi %s2650_s0, %s3137_s0  }
   0xa   : > { %3118 = sst [smem:[#allocation6_spill]] %s2539_s20  ;;  %s2084_s22 = sadd.s32 4294967294, %s2543_s21  }
   0xb   : > { %3119 = sst [smem:[#allocation7_spill]] %s2543_s21  ;;  %s2675_s2 = sadd.s32 1, %s2543_s21  }
   0xc   : > { %3120 = sst [smem:[#allocation8_spill]] %s2675_s2  ;;  %s443_s23 = sadd.s32 1, %s2539_s20 }
   0xd   : > { %s440_s24 = ssub.s32 %s2543_s21, %s2675_s2  ;;  %p453_p0 = scmp.ne.s32.totalorder %s2539_s20, %s2535_s30 }
   0xe   : > { %p441_p1 = scmp.eq.s32.totalorder %s440_s24, 0  ;;  %p454_p2 = scmp.eq.s32.totalorder %s2671_s1, 1 }
   0xf   : > { %p459_p3 = scmp.ne.s32.totalorder %s2535_s30, %s2531_s0  ;;  %p460_p4 = scmp.eq.s32.totalorder %s2084_s22, 1 }
  0x10   : > { %s2686_s25 = scalar_select %p441_p1, %s2539_s20, %s443_s23  }
  0x11   : > { %p2688_p5 = por %p454_p2, %p453_p0  ;;  %p2692_p6 = por %p460_p4, %p459_p3 }
  0x12   : > { %3121 = sst [smem:[#allocation9_spill]] %s2686_s25  ;;  %p2087_p7 = scmp.ge.s32.totalorder %s2543_s21, 1 }
  0x13   : > { %s3123_s26 = scalar_select %p2692_p6, 1, 0 }
  0x14   : > { %p540_p8 = scmp.lt.s32.totalorder %s2543_s21, 3 }
  0x15   : > { %3124 = sst [smem:[#allocation10_spill]] %s3123_s26 }
  0x16   : > { %p541_p9 = pnand %p2087_p7, %p540_p8 }
  0x17   : > { %p596_p10 = scmp.lt.s32.totalorder (!%p541_p9), %s2671_s1, 1  ;;  %s3125_s2 = sld [smem:[#allocation11_spill]] (!%p541_p9) }
  0x18   : > { %544 = sbr.rel (%p541_p9) target bundleno = 1807 (0x70f), region = 96  ;;  %s3127_s21 = sld [smem:[#allocation13_spill]] (!%p541_p9) }
  0x19   : > { %s3129_s4 = sld [smem:[#allocation15_spill]] (!%p541_p9)  ;;  %s593_s22 = sand.u32 (!%p541_p9), 1, %s2535_s30  }
  0x1a   : > { %s3130_s25 = sld [smem:[#allocation14_spill]] (!%p541_p9)  ;;  %s2088_s23 = sshll.u32 (!%p541_p9), %s593_s22, 4 }
  0x1b   : > { %s2183_s24 = sshll.u32 (!%p541_p9), %s2671_s1, 8 }
  0x1d   : > { %vm660_vm0 = vcmask 1041408   ;;  %v2545_v0 = vmov 0   ;;  %s597_s27 = scalar_select %p596_p10, %s2671_s1, 1  ;;  %vm661_vm1 = vcmask 1042432   ;;  %v2546_v1 = vmov 65535   ;;  %v2415_v3 = vld [vmem:[%s3093_s11 + $0x78] sm:$0xff]  }
  0x1e   : > { %702 = vmatprep.mubr.bf16.mxu0 %v2545_v0  ;;  %2402 = vset.pattern.permute.xlu0 %v2545_v0  ;;  %v662_v2 = vsel %vm660_vm0, 4294967295, %v2546_v1  ;;  %v2416_v4 = vld [vmem:[%s3093_s11 + $0x38] sm:$0xff]   ;;  %v2417_v5 = vld [vmem:[%s3093_s11 + $0x70] sm:$0xff]   ;;  %v2419_v15 = vld [vmem:[%s3093_s11 + $0x68] sm:$0xff]   ;;  %vm650_vm2 = vcmask 302080   ;;  %vm2548_vm3 = vmmov 0  }
  0x1f   : > { %2403 = vset.pattern.permute.xlu1 %v2545_v0  ;;  %s2358_s28 = smul.u32 40, %s597_s27  ;;  %2184 = vmatprep.subr.bf16.mxu1 %v2415_v3  ;;  %v663_v7 = vsel %vm661_vm1, %v662_v2, 0  ;;  %v2418_v13 = vld [vmem:[%s3093_s11 + $0x30] sm:$0xff]   ;;  %v2420_v16 = vld [vmem:[%s3093_s11 + $0x28] sm:$0xff]   ;;  %v2421_v17 = vld [vmem:[%s3093_s11 + $0x60] sm:$0xff]   ;;  %vm941_vm4 = vcmask 293888  }
  0x20   : > { %2185 = vmatpush3.bf16.msra.mxu1 %v2416_v4  ;;  %v2422_v20 = vld [vmem:[%s3093_s11 + $0x20] sm:$0xff]   ;;  %v2423_v21 = vld [vmem:[%s3093_s11 + $0x58] sm:$0xff]   ;;  %v2425_v24 = vld [vmem:[%s3093_s11 + $0x50] sm:$0xff]   ;;  %vm1260_vm5 = vcmask 97280   ;;  %vm1267_vm6 = vcmask 1045504   ;;  %vm1443_vm7 = vcmask 1043456  }
  0x21   : > { %s600_s26 = scalar_lea.vmem %s3125_s2, %s2358_s28  ;;  %2186 = vmatprep.subr.bf16.mxu1 %v2417_v5  ;;  %s3126_s2 = sld [smem:[#allocation12_spill]]  ;;  %v2424_v23 = vld [vmem:[%s3093_s11 + $0x18] sm:$0xff]   ;;  %v2426_v27 = vld [vmem:[%s3093_s11 + $0x10] sm:$0xff]   ;;  %v2427_v28 = vld [vmem:[%s3093_s11 + $0x48] sm:$0xff]   ;;  %vm1439_vm8 = vcmask 195584   ;;  %vm1682_vm9 = vcmask 130048  }
  0x22   : > { %v606_v6 = vld [vmem:[%s600_s26 + $0x20] sm:$0x77]  ;;  %v2406_v10 = vld [vmem:[%s600_s26 + $0x14] ss:$8 sps:$4 sm:$0xff]   ;;  %v2408_v14 = vld [vmem:[%s600_s26 + $0x10] ss:$8 sps:$4 sm:$0xff]  }
  0x23   : > { %v2098_v8 = vcombine.high %v606_v6, %v606_v6  ;;  %v2097_v9 = vcombine.low %v606_v6, %v606_v6  ;;  %v2409_v18 = vld [vmem:[%s600_s26 + $0x4] ss:$8 sps:$4 sm:$0xff]   ;;  %v2411_v19 = vld [vmem:[%s600_s26] ss:$8 sps:$4 sm:$0xff]   ;;  %v2431_v32 = vld [vmem:[%s3094_s12 + $0x78] sm:$0xff]   ;;  %s3128_s26 = smov %s3127_s21  ;;  %s595_s27 = scalar_lea.vmem [#allocation2], %s2088_s23 }
  0x24   : > { %2187 = vmatpush3.bf16.msra.mxu1 %v2418_v13  ;;  %v2428_v29 = vld [vmem:[%s3093_s11 + $0x8] sm:$0xff]   ;;  %v2429_v30 = vld [vmem:[%s3093_s11 + $0x40] sm:$0xff]   ;;  %v2432_v43 = vld [vmem:[%s3094_s12 + $0x38] sm:$0xff]   ;;  %v2547_v13 = vmov 0.0   ;;  %s2025_s29 = sshll.u32 %s595_s27, 4  ;;  %s2011_s1 = scalar_lea.sflag [#allocation3], %s593_s22  ;;  %s3043_s29 = int_to_ptr.vmem [resolvable:$true] %s2025_s29 }
  0x25   : > { %v668_v11 = vand.u32 %v2098_v8, %v663_v7  ;;  %v665_v12 = vand.u32 %v2097_v9, %v663_v7  ;;  %2188 = vmatprep.subr.bf16.mxu1 %v2419_v15  ;;  %v2430_v31 = vld [vmem:[%s3093_s11] sm:$0xff]   ;;  %v2433_v46 = vld [vmem:[%s3094_s12 + $0x70] sm:$0xff]   ;;  %v2435_v53 = vld [vmem:[%s3094_s12 + $0x68] sm:$0xff]   ;;  %s2549_s28 = smov [#allocation2]  }
  0x26   : > { %v2434_v51 = vld [vmem:[%s3094_s12 + $0x30] sm:$0xff]   ;;  %v2436_v58 = vld [vmem:[%s3094_s12 + $0x28] sm:$0xff]   ;;  %v2437_v60 = vld [vmem:[%s3094_s12 + $0x60] sm:$0xff]   ;;  %s2487_s23 = sshll.u32 %s2549_s28, 4  ;;  %s2488_s23 = int_to_ptr.vmem [resolvable:$false] %s2487_s23 }
  0x27   : > { %680 = vmatprep.subr.bf16.mxu0 %v668_v11  ;;  %v2412_v22 = vld [vmem:[%s3126_s2] sm:$0xff]   ;;  %v2413_v25 = vld [vmem:[%s3126_s2 + $0x8] sm:$0xff]   ;;  %v2414_v26 = vld [vmem:[%s3126_s2 + $0x10] ss:$0 sps:$4 sm:$0x33]   ;;  %s3041_s2 = scalar_lea.hbm %s3101_s19, %s2183_s24  ;;  %s2489_s20 = scalar_lea.vmem %s2488_s23, 512 }
  0x28   : > { %681 = vmatpush1.bf16.msra.mxu0 %v665_v12  ;;  %2189 = vmatpush3.bf16.msra.mxu1 %v2420_v16  ;;  %v2438_v2 = vld [vmem:[%s3094_s12 + $0x20] sm:$0xff]   ;;  %v2439_v4 = vld [vmem:[%s3094_s12 + $0x58] sm:$0xff]   ;;  %v2441_v7 = vld [vmem:[%s3094_s12 + $0x50] sm:$0xff]   ;;  %p2490_p0 = scmp.lt.s32.totalorder %s3043_s29, %s2488_s23 }
  0x29   : > { %682 = vmatprep.subr.bf16.mxu0 %v2406_v10  ;;  %2190 = vmatprep.subr.bf16.mxu1 %v2421_v17  ;;  %v2440_v6 = vld [vmem:[%s3094_s12 + $0x18] sm:$0xff]   ;;  %v2442_v8 = vld [vmem:[%s3094_s12 + $0x10] sm:$0xff]   ;;  %v2443_v9 = vld [vmem:[%s3094_s12 + $0x48] sm:$0xff]  }
  0x2a   : > { %v2444_v10 = vld [vmem:[%s3094_s12 + $0x8] sm:$0xff]   ;;  %v2445_v11 = vld [vmem:[%s3094_s12 + $0x40] sm:$0xff]  }
  0x2b   : > { %v2446_v12 = vld [vmem:[%s3094_s12] sm:$0xff]  }
  0x2c   : > { %683 = vmatpush1.bf16.msra.mxu0 %v2408_v14  ;;  %2191 = vmatpush3.bf16.msra.mxu1 %v2422_v20 }
  0x2d   : > { %684 = vmatprep.subr.bf16.mxu0 %v2409_v18  ;;  %2192 = vmatprep.subr.bf16.mxu1 %v2423_v21 }
  0x30   : > { %685 = vmatpush1.bf16.msra.mxu0 %v2411_v19  ;;  %2193 = vmatpush3.bf16.msra.mxu1 %v2424_v23 }
  0x31   : > { %2194 = vmatprep.subr.bf16.mxu1 %v2425_v24  ;;  %2280 = vmatprep.subr.bf16.mxu0 %v2547_v13 }
  0x33   : > { %2099 = vmatmul.mubr.msk.bf16.vlgmr.msra.gmra.mxu0 %vm650_vm2, %v2412_v22 }
  0x34   : > { %712 = vmatprep.mubr.bf16.mxu0 %v2545_v0  ;;  %2195 = vmatpush3.bf16.msra.mxu1 %v2426_v27 }
  0x35   : > { %2196 = vmatprep.subr.bf16.mxu1 %v2427_v28 }
  0x38   : > { %2197 = vmatpush3.bf16.msra.mxu1 %v2428_v29 }
  0x39   : > { %2198 = vmatprep.subr.bf16.mxu1 %v2429_v30 }
  0x3b   : > { %2100 = vmatmul.mubr.msk.bf16.gmra.mxu0 %vm650_vm2, %v2413_v25 }
  0x3c   : > { %722 = vmatprep.mubr.bf16.mxu0 %v2545_v0  ;;  %2199 = vmatpush3.bf16.msra.mxu1 %v2430_v31 }
  0x3d   : > { %2222 = vmatprep.subr.bf16.mxu1 %v2431_v32 }
  0x43   : > { %2101 = vmatmul.mubr.msk.bf16.gmra.mxu0 %vm650_vm2, %v2414_v26 }
  0x44   : > { %2286 = vmatprep.mubr.msk.bf16.mxu0 %vm2548_vm3, %v2547_v13 }
  0xf3   : > { %v2772_v33 = vpop.f32.mrf.mxu0 }
  0xf4   : > { %v731_v40 = vmax.f32 %v2772_v33, 0.0 }
  0xf5   : > { %v2774_v34 = vpop.f32.mrf.mxu0 }
  0xf6   : > { %v732_v38 = vmax.f32 %v2774_v34, 0.0 }
  0xf7   : > { %v2776_v35 = vpop.f32.mrf.mxu0 }
  0xf8   : > { %v733_v36 = vmax.f32 %v2776_v35, 0.0  ;;  %v1945_v35 = vld [vmem:[%s3091_s9] sm:$0xf] }
  0xf9   : > { %v2779_v37 = vpop.f32.mrf.mxu0 }
  0xfa   : > { %v734_v39 = vmax.f32 %v2779_v37, 0.0  ;;  %v741_v44 = vpack.c.bf16 %v733_v36, %v731_v40 }
  0xfb   : > { %v2784_v41 = vpop.f32.mrf.mxu0 }
  0xfc   : > { %v742_v42 = vpack.c.bf16 %v734_v39, %v732_v38  ;;  %v735_v47 = vmax.f32 %v2784_v41, 0.0 }
  0xfd   : > { %v2797_v45 = vpop.f32.mrf.mxu0 }
  0xfe   : > { %909 = vmatprep.mubr.bf16.mxu1 %v742_v42  ;;  %v736_v49 = vmax.f32 %v2797_v45, 0.0 }
  0xff   : > { %v2803_v48 = vpop.f32.mrf.mxu0  ;;  %910 = vmatmul.mubr.bf16.vlgmr.msra.gmra.mxu1 %v741_v44 }
 0x100   : > { %v737_v50 = vmax.f32 %v2803_v48, 0.0  ;;  %2223 = vmatpush3.bf16.msra.mxu1 %v2432_v43 }
 0x101   : > { %v2810_v52 = vpop.f32.mrf.mxu0  ;;  %2224 = vmatprep.subr.bf16.mxu1 %v2433_v46 }
 0x102   : > { %v738_v54 = vmax.f32 %v2810_v52, 0.0  ;;  %v743_v55 = vpack.c.bf16 %v737_v50, %v735_v47 }
 0x103   : > { %v724_v56 = vpop.f32.mrf.mxu0 }
 0x104   : > { %v744_v57 = vpack.c.bf16 %v738_v54, %v736_v49  ;;  %2225 = vmatpush3.bf16.msra.mxu1 %v2434_v51  ;;  %v2832_v62 = vmax.f32 %v724_v56, 0.0 }
 0x105   : > { %2226 = vmatprep.subr.bf16.mxu1 %v2435_v53  ;;  %v726_v59 = vpop.f32.mrf.mxu0 }
 0x106   : > { %917 = vmatprep.mubr.bf16.mxu1 %v744_v57  ;;  %v2830_v61 = vmax.f32 %v726_v59, 0.0  ;;  %v745_v5 = vpack.c.bf16 %v2832_v62, %v2832_v62 }
 0x107   : > { %918 = vmatmul.mubr.bf16.gmra.mxu1 %v743_v55  ;;  %v728_v63 = vpop.f32.mrf.mxu0 }
 0x108   : > { %2227 = vmatpush3.bf16.msra.mxu1 %v2436_v58  ;;  %v746_v1 = vpack.c.bf16 %v2830_v61, %v2830_v61 }
 0x109   : > { %2228 = vmatprep.subr.bf16.mxu1 %v2437_v60  ;;  %v729_v3 = vpop.f32.mrf.mxu0 }
 0x10a   : > { %925 = vmatprep.mubr.bf16.mxu1 %v746_v1 }
 0x10c   : > { %2229 = vmatpush3.bf16.msra.mxu1 %v2438_v2 }
 0x10d   : > { %2230 = vmatprep.subr.bf16.mxu1 %v2439_v4 }
 0x10f   : > { %926 = vmatmul.mubr.bf16.gmra.mxu1 %v745_v5 }
 0x110   : > { %2231 = vmatpush3.bf16.msra.mxu1 %v2440_v6  ;;  %1151 = vmatprep.mubr.bf16.mxu1 %v742_v42 }
 0x111   : > { %2232 = vmatprep.subr.bf16.mxu1 %v2441_v7 }
 0x114   : > { %2233 = vmatpush3.bf16.msra.mxu1 %v2442_v8 }
 0x115   : > { %2234 = vmatprep.subr.bf16.mxu1 %v2443_v9 }
 0x118   : > { %2235 = vmatpush3.bf16.msra.mxu1 %v2444_v10 }
 0x119   : > { %2236 = vmatprep.subr.bf16.mxu1 %v2445_v11 }
 0x11c   : > { %2237 = vmatpush3.bf16.msra.mxu1 %v2446_v12  ;;  %v2448_v12 = vld [vmem:[%s3096_s14] sm:$0x3f]  }
 0x11f   : > { %1152 = vmatmul.mubr.bf16.vlgmr.msra.gmra.mxu1 %v741_v44  ;;  %v2447_v44 = vld [vmem:[%s3095_s13] sm:$0x3f]  }
 0x120   : > { %1159 = vmatprep.mubr.bf16.mxu1 %v744_v57 }
 0x127   : > { %1160 = vmatmul.mubr.bf16.gmra.mxu1 %v743_v55 }
 0x128   : > { %1167 = vmatprep.mubr.bf16.mxu1 %v746_v1 }
 0x12f   : > { %1168 = vmatmul.mubr.bf16.gmra.mxu1 %v745_v5 }
 0x130   : > { %1724 = vmatprep.mubr.bf16.mxu1 %v2545_v0 }
 0x1bf   : > { %v2200_v14 = vpop.f32.mrf.mxu1 }
 0x1c1   : > { %v2201_v15 = vpop.f32.mrf.mxu1 }
 0x1c2   : > { %v2202_v42 = vadd.f32 %v2201_v15, %v2200_v14  ;;  %v2449_v14 = vld [vmem:[%s3127_s21] sm:$0xff]   ;;  %v1236_v15 = vld [vmem:[%s3129_s4 + $0x10] sm:$0xff]  ;;  %s2483_s21 = scalar_lea.vmem %s3043_s29, 256 }
 0x1c3   : > { %v2203_v16 = vpop.f32.mrf.mxu1  ;;  %1249 = vperm.xlu0 %2402, %v1236_v15   ;;  %p2484_p11 = scmp.ne.s32.totalorder %s3043_s29, %s2483_s21  ;;  %p2491_p1 = scmp.lt.s32.totalorder %s2489_s20, %s2483_s21 }
 0x1c5   : > { %v2204_v17 = vpop.f32.mrf.mxu1  ;;  %p2485_p12 = pnand %p2484_p11, %p2688_p5  ;;  %p2492_p2 = por %p2491_p1, %p2490_p0 }
 0x1c6   : > { %v2205_v31 = vadd.f32 %v2204_v17, %v2203_v16  ;;  %v1235_v16 = vld [vmem:[%s3129_s4 + $0x8] sm:$0xff]  ;;  %v1234_v17 = vld [vmem:[%s3129_s4] sm:$0xff] }
 0x1c7   : > { %v2206_v18 = vpop.f32.mrf.mxu1  ;;  %1244 = vperm.xlu1 %2403, %v1235_v16   ;;  %1239 = vperm.xlu0 %2402, %v1234_v17   ;;  %p2486_p13 = pneg %p2485_p12 }
 0x1c8   : > { %v933_v43 = vpack.c.bf16 %v2205_v31, %v2202_v42 }
 0x1c9   : > { %v2207_v19 = vpop.f32.mrf.mxu1  ;;  %p2493_p3 = pnand %p2492_p2, %p2486_p13 }
 0x1ca   : > { %v2208_v30 = vadd.f32 %v2207_v19, %v2206_v18  ;;  %v1422_v18 = vld [vmem:[%s3088_s6] sm:$0xff]  ;;  %v1423_v19 = vld [vmem:[%s3088_s6 + $0x8] sm:$0xf] }
 0x1cb   : > { %v2209_v20 = vpop.f32.mrf.mxu1  ;;  %1426 = vperm.xlu1 %2403, %v1422_v18   ;;  %1431 = vperm.xlu0 %2402, %v1423_v19  }
 0x1cd   : > { %v2210_v21 = vpop.f32.mrf.mxu1 }
 0x1ce   : > { %v2211_v27 = vadd.f32 %v2210_v21, %v2209_v20  ;;  %v1504_v20 = vld [vmem:[%s3090_s8] sm:$0xff]  ;;  %v1505_v21 = vld [vmem:[%s3090_s8 + $0x8] sm:$0xf] }
 0x1cf   : > { %v2212_v22 = vpop.f32.mrf.mxu1  ;;  %1508 = vperm.xlu1 %2403, %v1504_v20   ;;  %1513 = vperm.xlu0 %2402, %v1505_v21  }
 0x1d0   : > { %v934_v32 = vpack.c.bf16 %v2211_v27, %v2208_v30  ;;  %v2451_v30 = vld [vmem:[%s3130_s25] sm:$0xff]  }
 0x1d1   : > { %v2213_v23 = vpop.f32.mrf.mxu1 }
 0x1d2   : > { %v2214_v24 = vadd.f32 %v2213_v23, %v2212_v22  ;;  %v1952_v22 = vld [vmem:[%s3092_s10] sm:$0xff] }
 0x1d3   : > { %v2215_v25 = vpop.f32.mrf.mxu1  ;;  %1955 = vperm.xlu1 %2403, %v1952_v22   ;;  %v2453_v22 = vld [vmem:[%s3087_s5] sm:$0x3f]  }
 0x1d4   : > { %v935_v26 = vpack.c.bf16 %v2214_v24, %v2214_v24 }
 0x1d5   : > { %v2216_v28 = vpop.f32.mrf.mxu1 }
 0x1d6   : > { %v946_v29 = vsel %vm660_vm0, %v935_v26, 0 }
 0x1d7   : > { %2281 = vmatpush3.bf16.msra.mxu0 %v946_v29  ;;  %v2450_v29 = vld [vmem:[%s3128_s26 + $0x8] ss:$0 sps:$4 sm:$0xff]  }
 0x1d8   : > { %2282 = vmatprep.subr.bf16.mxu0 %v2547_v13 }
 0x1db   : > { %2283 = vmatpush3.bf16.msra.mxu0 %v934_v32 }
 0x1dc   : > { %2284 = vmatprep.subr.bf16.mxu0 %v2547_v13 }
 0x1df   : > { %v2238_v46 = vpop.f32.mrf.mxu1  ;;  %2285 = vmatpush3.bf16.msra.mxu0 %v933_v43 }
 0x1e0   : > { %2290 = vmatprep.subr.bf16.mxu0 %v2547_v13 }
 0x1e1   : > { %v2239_v51 = vpop.f32.mrf.mxu1 }
 0x1e2   : > { %2287 = vmatmul.mubr.msk.bf16.vlgmr.msra.gmra.mxu0 %vm941_vm4, %v2447_v44  ;;  %v2240_v10 = vadd.f32 %v2239_v51, %v2238_v46  ;;  %v2452_v51 = vld [vmem:[%s3130_s25 + $0x8] ss:$0 sps:$4 sm:$0xff]  }
 0x1e3   : > { %v2241_v53 = vpop.f32.mrf.mxu1  ;;  %2296 = vmatprep.mubr.msk.bf16.mxu0 %vm2548_vm3, %v2547_v13 }
 0x1e5   : > { %v2242_v55 = vpop.f32.mrf.mxu1 }
 0x1e6   : > { %v2243_v8 = vadd.f32 %v2242_v55, %v2241_v53 }
 0x1e7   : > { %v2244_v56 = vpop.f32.mrf.mxu1 }
 0x1e8   : > { %v1175_v11 = vpack.c.bf16 %v2243_v8, %v2240_v10 }
 0x1e9   : > { %v2245_v57 = vpop.f32.mrf.mxu1 }
 0x1ea   : > { %v2246_v7 = vadd.f32 %v2245_v57, %v2244_v56 }
 0x1eb   : > { %v2247_v58 = vpop.f32.mrf.mxu1 }
 0x1ed   : > { %v2248_v59 = vpop.f32.mrf.mxu1 }
 0x1ee   : > { %v2249_v4 = vadd.f32 %v2248_v59, %v2247_v58 }
 0x1ef   : > { %v2250_v60 = vpop.f32.mrf.mxu1 }
 0x1f0   : > { %v1176_v9 = vpack.c.bf16 %v2249_v4, %v2246_v7 }
 0x1f1   : > { %v2251_v63 = vpop.f32.mrf.mxu1 }
 0x1f2   : > { %v2252_v1 = vadd.f32 %v2251_v63, %v2250_v60 }
 0x1f3   : > { %v2253_v2 = vpop.f32.mrf.mxu1 }
 0x1f4   : > { %v1177_v3 = vpack.c.bf16 %v2252_v1, %v2252_v1 }
 0x1f5   : > { %v2254_v5 = vpop.f32.mrf.mxu1 }
 0x1f6   : > { %v1187_v6 = vsel %vm660_vm0, %v1177_v3, 0 }
 0x1f7   : > { %2291 = vmatpush3.bf16.msra.mxu0 %v1187_v6 }
 0x1f8   : > { %2292 = vmatprep.subr.bf16.mxu0 %v2547_v13 }
 0x1fb   : > { %2293 = vmatpush3.bf16.msra.mxu0 %v1176_v9 }
 0x1fc   : > { %2294 = vmatprep.subr.bf16.mxu0 %v2547_v13 }
 0x1ff   : > { %2295 = vmatpush3.bf16.msra.mxu0 %v1175_v11 }
 0x202   : > { %2297 = vmatmul.mubr.msk.bf16.vlgmr.msra.gmra.mxu0 %vm941_vm4, %v2448_v12 }
 0x203   : > { %2302 = vmatprep.mubr.msk.bf16.mxu0 %vm1260_vm5, %v2449_v14 }
 0x23e   : > { %v1250_v53 = vpop.permute.xlu0 %1249 }
 0x242   : > { %v1240_v58 = vpop.permute.xlu0 %1239  ;;  %v1245_v3 = vpop.permute.xlu1 %1244 }
 0x2a2   : > { %v982_v23 = vpop.f32.mrf.mxu0 }
 0x2a4   : > { %v2288_v24 = vpop.f32.mrf.mxu0 }
 0x2a6   : > { %v985_v25 = vpop.f32.mrf.mxu0 }
 0x2a7   : > { %v1233_v26 = vpack.c.bf16 %v985_v25, %v982_v23 }
 0x2a8   : > { %v2289_v27 = vpop.f32.mrf.mxu0 }
 0x2a9   : > { %v1269_v28 = vsel %vm1267_vm6, %v1233_v26, 0  ;;  %2356 = vmatprep.subr.msk.bf16.mxu0 %vm1267_vm6, %v1233_v26 }
 0x2aa   : > { %2301 = vmatpush3.bf16.msra.mxu0 %v1269_v28 }
 0x2ad   : > { %2303 = vmatmul.mubr.msk.bf16.vlgmr.msra.gmra.mxu0 %vm1260_vm5, %v2450_v29 }
 0x2ae   : > { %2308 = vmatprep.mubr.msk.bf16.mxu0 %vm1260_vm5, %v2451_v30 }
 0x2c2   : > { %v1223_v31 = vpop.f32.mrf.mxu0 }
 0x2c4   : > { %v2298_v32 = vpop.f32.mrf.mxu0 }
 0x2c6   : > { %v1226_v42 = vpop.f32.mrf.mxu0 }
 0x2c7   : > { %v1337_v43 = vpack.c.bf16 %v1226_v42, %v1223_v31 }
 0x2c8   : > { %v2299_v44 = vpop.f32.mrf.mxu0 }
 0x2c9   : > { %v1353_v46 = vsel %vm1267_vm6, %v1337_v43, 0  ;;  %2357 = vmatprep.subr.msk.bf16.mxu0 %vm1267_vm6, %v1337_v43 }
 0x2ca   : > { %2307 = vmatpush3.bf16.msra.mxu0 %v1353_v46 }
 0x2cb   : > { %2312 = vmatprep.subr.bf16.mxu0 %v2547_v13 }
 0x2cd   : > { %2309 = vmatmul.mubr.msk.bf16.vlgmr.msra.gmra.mxu0 %vm1260_vm5, %v2452_v51 }
 0x2ce   : > { %2316 = vmatprep.mubr.msk.bf16.mxu0 %vm2548_vm3, %v2547_v13 }
 0x36d   : > { %v2304_v55 = vpop.f32.mrf.mxu0 }
 0x36e   : > { %v1314_v56 = vadd.f32 %v2304_v55, %v1250_v53 }
 0x36f   : > { %v1305_v57 = vpop.f32.mrf.mxu0 }
 0x370   : > { %v1321_v59 = vadd.f32 3.0, %v1314_v56  ;;  %v1306_v60 = vadd.f32 %v1305_v57, %v1240_v58 }
 0x371   : > { %v2305_v63 = vpop.f32.mrf.mxu0 }
 0x372   : > { %v1324_v1 = vmax.f32 %v1321_v59, 0.0  ;;  %v1319_v2 = vadd.f32 3.0, %v1306_v60 }
 0x373   : > { %v1308_v4 = vpop.f32.mrf.mxu0 }
 0x374   : > { %v1327_v5 = vmin.f32 %v1324_v1, 6.0  ;;  %v1322_v6 = vmax.f32 %v1319_v2, 0.0  ;;  %v1309_v7 = vadd.f32 %v1308_v4, %v1245_v3  ;;  %v1427_v4 = vpop.permute.xlu1 %1426 }
 0x376   : > { %v1330_v8 = vmul.f32 %v1327_v5, %v1314_v56  ;;  %v1325_v9 = vmin.f32 %v1322_v6, 6.0  ;;  %v1320_v10 = vadd.f32 3.0, %v1309_v7 }
 0x378   : > { %v1333_v11 = vmul.f32 0.16666667, %v1330_v8  ;;  %v1323_v12 = vmax.f32 %v1320_v10, 0.0  ;;  %v1328_v15 = vmul.f32 %v1325_v9, %v1306_v60  ;;  %v1432_v9 = vpop.permute.xlu0 %1431 }
 0x37a   : > { %v1421_v14 = vpack.c.bf16 %v1333_v11, %v1333_v11  ;;  %v1326_v16 = vmin.f32 %v1323_v12, 6.0  ;;  %v1331_v19 = vmul.f32 0.16666667, %v1328_v15 }
 0x37c   : > { %v1329_v17 = vmul.f32 %v1326_v16, %v1309_v7  ;;  %v1445_v18 = vsel %vm1443_vm7, %v1421_v14, 0 }
 0x37d   : > { %2313 = vmatpush3.bf16.msra.mxu0 %v1445_v18 }
 0x37e   : > { %v1332_v20 = vmul.f32 0.16666667, %v1329_v17  ;;  %2314 = vmatprep.subr.bf16.mxu0 %v2547_v13 }
 0x380   : > { %v1420_v21 = vpack.c.bf16 %v1332_v20, %v1331_v19  ;;  %v1509_v19 = vpop.permute.xlu1 %1508 }
 0x382   : > { %2315 = vmatpush3.bf16.msra.mxu0 %v1420_v21 }
 0x383   : > { %2320 = vmatprep.subr.bf16.mxu0 %v2547_v13 }
 0x385   : > { %2317 = vmatmul.mubr.msk.bf16.vlgmr.msra.gmra.mxu0 %vm1439_vm8, %v2453_v22 }
 0x386   : > { %2324 = vmatprep.mubr.msk.bf16.mxu0 %vm2548_vm3, %v2547_v13 }
 0x38d   : > { %v2310_v23 = vpop.f32.mrf.mxu0 }
 0x38e   : > { %v1398_v24 = vadd.f32 %v2310_v23, %v1250_v53 }
 0x38f   : > { %v1389_v25 = vpop.f32.mrf.mxu0 }
 0x390   : > { %v1405_v26 = vadd.f32 3.0, %v1398_v24  ;;  %v1390_v27 = vadd.f32 %v1389_v25, %v1240_v58 }
 0x391   : > { %v2311_v28 = vpop.f32.mrf.mxu0 }
 0x392   : > { %v1408_v29 = vmax.f32 %v1405_v26, 0.0  ;;  %v1403_v30 = vadd.f32 3.0, %v1390_v27 }
 0x393   : > { %v1392_v31 = vpop.f32.mrf.mxu0 }
 0x394   : > { %v1411_v32 = vmin.f32 %v1408_v29, 6.0  ;;  %v1406_v42 = vmax.f32 %v1403_v30, 0.0  ;;  %v1393_v43 = vadd.f32 %v1392_v31, %v1245_v3  ;;  %v2454_v3 = vld [vmem:[%s3089_s7] sm:$0x3f]  }
 0x396   : > { %v1414_v44 = vmul.f32 %v1411_v32, %v1398_v24  ;;  %v1409_v46 = vmin.f32 %v1406_v42, 6.0  ;;  %v1404_v51 = vadd.f32 3.0, %v1393_v43  ;;  %v1514_v24 = vpop.permute.xlu0 %1513  ;;  %v2455_v42 = vld [vmem:[%s3097_s15] sm:$0xff]  }
 0x398   : > { %v1417_v55 = vmul.f32 0.16666667, %v1414_v44  ;;  %v1407_v56 = vmax.f32 %v1404_v51, 0.0  ;;  %v1412_v59 = vmul.f32 %v1409_v46, %v1390_v27 }
 0x39a   : > { %v1503_v57 = vpack.c.bf16 %v1417_v55, %v1417_v55  ;;  %v1410_v60 = vmin.f32 %v1407_v56, 6.0  ;;  %v1415_v58 = vmul.f32 0.16666667, %v1412_v59  ;;  %v2457_v56 = vld [vmem:[%s3097_s15 + $0x10] ss:$0 sps:$4 sm:$0x33]  }
 0x39c   : > { %v1413_v63 = vmul.f32 %v1410_v60, %v1393_v43  ;;  %v1525_v53 = vsel %vm1443_vm7, %v1503_v57, 0  ;;  %v2456_v43 = vld [vmem:[%s3097_s15 + $0x8] sm:$0xff]  }
 0x39d   : > { %2321 = vmatpush3.bf16.msra.mxu0 %v1525_v53  ;;  %v2458_v53 = vld [vmem:[%s3098_s16] sm:$0xff]  }
 0x39e   : > { %v1416_v1 = vmul.f32 0.16666667, %v1413_v63  ;;  %2322 = vmatprep.subr.bf16.mxu0 %v2547_v13 }
 0x3a0   : > { %v1502_v2 = vpack.c.bf16 %v1416_v1, %v1415_v58  ;;  %v2459_v58 = vld [vmem:[%s3098_s16 + $0x8] sm:$0xff]   ;;  %v2460_v1 = vld [vmem:[%s3098_s16 + $0x10] ss:$0 sps:$4 sm:$0x33]  }
 0x3a2   : > { %2323 = vmatpush3.bf16.msra.mxu0 %v1502_v2  ;;  %v2461_v2 = vld [vmem:[%s3099_s17] ss:$8 sps:$4 sm:$0xff]  }
 0x3a3   : > { %2328 = vmatprep.subr.bf16.mxu0 %v2547_v13 }
 0x3a5   : > { %2325 = vmatmul.mubr.msk.bf16.vlgmr.msra.gmra.mxu0 %vm1439_vm8, %v2454_v3  ;;  %v2463_v3 = vld [vmem:[%s3099_s17 + $0x4] ss:$8 sps:$4 sm:$0xff]  }
 0x3a6   : > { %2330 = vmatprep.mubr.msk.bf16.mxu0 %vm2548_vm3, %v2547_v13  ;;  %1706 = vmatprep.subr.bf16.mxu1 %v2463_v3 }
 0x3a7   : > { %1707 = vmatpush1.bf16.msra.mxu1 %v2461_v2 }
 0x445   : > { %v1481_v5 = vpop.f32.mrf.mxu0 }
 0x446   : > { %v1482_v6 = vadd.f32 %v1481_v5, %v1427_v4 }
 0x447   : > { %v2318_v7 = vpop.f32.mrf.mxu0 }
 0x448   : > { %v2148_v8 = vmul.f32 -1.442695, %v1482_v6  ;;  %v2464_v7 = vld [vmem:[%s3100_s18] ss:$8 sps:$4 sm:$0xff]  }
 0x449   : > { %v1484_v10 = vpop.f32.mrf.mxu0 }
 0x44a   : > { %2467 = vpow2.f32 %v2148_v8  ;;  %v1485_v11 = vadd.f32 %v1484_v10, %v1432_v9 }
 0x44b   : > { %v2319_v12 = vpop.f32.mrf.mxu0 }
 0x44c   : > { %v2149_v14 = vmul.f32 -1.442695, %v1485_v11 }
 0x44e   : > { %2469 = vpow2.f32 %v2149_v14 }
 0x457   : > { %v2468_v15 = vpop.eup %2467 }
 0x458   : > { %v1494_v16 = vadd.f32 1.0, %v2468_v15 }
 0x45a   : > { %2471 = vrcp.f32 %v1494_v16 }
 0x45b   : > { %v2470_v17 = vpop.eup %2469 }
 0x45c   : > { %v1495_v18 = vadd.f32 1.0, %v2470_v17 }
 0x45e   : > { %2473 = vrcp.f32 %v1495_v18 }
 0x465   : > { %v1561_v20 = vpop.f32.mrf.mxu0 }
 0x466   : > { %v1562_v21 = vadd.f32 %v1561_v20, %v1509_v19 }
 0x467   : > { %v2326_v22 = vpop.f32.mrf.mxu0  ;;  %v2472_v26 = vpop.eup %2471 }
 0x468   : > { %v2152_v23 = vmul.f32 -1.442695, %v1562_v21 }
 0x469   : > { %v1564_v25 = vpop.f32.mrf.mxu0 }
 0x46a   : > { %2475 = vpow2.f32 %v2152_v23  ;;  %v1565_v27 = vadd.f32 %v1564_v25, %v1514_v24 }
 0x46b   : > { %v2474_v28 = vpop.eup %2473  ;;  %v2327_v29 = vpop.f32.mrf.mxu0 }
 0x46c   : > { %v2153_v30 = vmul.f32 -1.442695, %v1565_v27  ;;  %v1585_v31 = vpack.c.bf16 %v2474_v28, %v2472_v26 }
 0x46e   : > { %2477 = vpow2.f32 %v2153_v30  ;;  %v1609_v32 = vsel %vm1267_vm6, %v1585_v31, 0 }
 0x46f   : > { %2329 = vmatpush3.bf16.msra.mxu0 %v1609_v32 }
 0x470   : > { %2342 = vmatprep.subr.bf16.mxu0 %v2547_v13 }
 0x472   : > { %2331 = vmatmul.mubr.msk.bf16.vlgmr.msra.gmra.mxu0 %vm1260_vm5, %v2455_v42 }
 0x473   : > { %2334 = vmatprep.mubr.msk.bf16.mxu0 %vm2548_vm3, %v2547_v13 }
 0x477   : > { %v2476_v44 = vpop.eup %2475 }
 0x478   : > { %v1574_v46 = vadd.f32 1.0, %v2476_v44 }
 0x47a   : > { %2335 = vmatmul.mubr.msk.bf16.gmra.mxu0 %vm1260_vm5, %v2456_v43  ;;  %2479 = vrcp.f32 %v1574_v46 }
 0x47b   : > { %v2478_v51 = vpop.eup %2477  ;;  %2338 = vmatprep.mubr.msk.bf16.mxu0 %vm2548_vm3, %v2547_v13 }
 0x47c   : > { %v1575_v55 = vadd.f32 1.0, %v2478_v51 }
 0x47e   : > { %2481 = vrcp.f32 %v1575_v55 }
 0x482   : > { %2339 = vmatmul.mubr.msk.bf16.gmra.mxu0 %vm1260_vm5, %v2457_v56 }
 0x483   : > { %2344 = vmatprep.mubr.msk.bf16.mxu0 %vm2548_vm3, %v2547_v13 }
 0x487   : > { %v2480_v57 = vpop.eup %2479 }
 0x48b   : > { %v2482_v59 = vpop.eup %2481 }
 0x48c   : > { %v1758_v60 = vpack.c.bf16 %v2482_v59, %v2480_v57 }
 0x48e   : > { %v1782_v63 = vsel %vm1267_vm6, %v1758_v60, 0 }
 0x48f   : > { %2343 = vmatpush3.bf16.msra.mxu0 %v1782_v63 }
 0x492   : > { %2345 = vmatmul.mubr.msk.bf16.vlgmr.msra.gmra.mxu0 %vm1260_vm5, %v2458_v53 }
 0x493   : > { %2348 = vmatprep.mubr.msk.bf16.mxu0 %vm2548_vm3, %v2547_v13 }
 0x49a   : > { %2349 = vmatmul.mubr.msk.bf16.gmra.mxu0 %vm1260_vm5, %v2459_v58 }
 0x49b   : > { %2352 = vmatprep.mubr.msk.bf16.mxu0 %vm2548_vm3, %v2547_v13  ;;  %v2466_v13 = vld [vmem:[%s3100_s18 + $0x4] ss:$8 sps:$4 sm:$0xff]  }
 0x49c   : > { %1878 = vmatprep.subr.bf16.mxu1 %v2466_v13 }
 0x4a2   : > { %2353 = vmatmul.mubr.msk.bf16.gmra.mxu0 %vm1260_vm5, %v2460_v1 }
 0x4a3   : > { %1999 = vmatprep.mubr.bf16.mxu0 %v2545_v0 }
 0x532   : > { %v1645_v4 = vpop.f32.mrf.mxu0 }
 0x534   : > { %v2332_v5 = vpop.f32.mrf.mxu0 }
 0x536   : > { %v1648_v6 = vpop.f32.mrf.mxu0 }
 0x537   : > { %v1669_v8 = vpack.c.bf16 %v1648_v6, %v1645_v4 }
 0x538   : > { %v2333_v9 = vpop.f32.mrf.mxu0 }
 0x539   : > { %2162 = vmatmul.mubr.msk.bf16.vlgmr.msra.gmra.mxu1 %vm1682_vm9, %v1669_v8 }
 0x53a   : > { %v1653_v10 = vpop.f32.mrf.mxu0  ;;  %1734 = vmatprep.mubr.bf16.mxu1 %v2545_v0  ;;  %1879 = vmatpush1.bf16.msra.mxu1 %v2464_v7 }
 0x53c   : > { %v2336_v11 = vpop.f32.mrf.mxu0 }
 0x53e   : > { %v1656_v12 = vpop.f32.mrf.mxu0 }
 0x53f   : > { %v1670_v14 = vpack.c.bf16 %v1656_v12, %v1653_v10 }
 0x540   : > { %v2337_v15 = vpop.f32.mrf.mxu0 }
 0x541   : > { %2163 = vmatmul.mubr.msk.bf16.gmra.mxu1 %vm1682_vm9, %v1670_v14 }
 0x542   : > { %v1661_v16 = vpop.f32.mrf.mxu0  ;;  %1744 = vmatprep.mubr.bf16.mxu1 %v2545_v0 }
 0x543   : > { %v1671_v18 = vpack.c.bf16 %v1661_v16, %v1661_v16 }
 0x544   : > { %v2340_v17 = vpop.f32.mrf.mxu0 }
 0x546   : > { %v1664_v19 = vpop.f32.mrf.mxu0 }
 0x548   : > { %v2341_v20 = vpop.f32.mrf.mxu0 }
 0x549   : > { %2164 = vmatmul.mubr.msk.bf16.gmra.mxu1 %vm1682_vm9, %v1671_v18 }
 0x54a   : > { %1896 = vmatprep.mubr.bf16.mxu1 %v2545_v0 }
 0x552   : > { %v1818_v21 = vpop.f32.mrf.mxu0 }
 0x554   : > { %v2346_v22 = vpop.f32.mrf.mxu0 }
 0x556   : > { %v1821_v23 = vpop.f32.mrf.mxu0 }
 0x557   : > { %v1842_v24 = vpack.c.bf16 %v1821_v23, %v1818_v21 }
 0x558   : > { %v2347_v25 = vpop.f32.mrf.mxu0 }
 0x559   : > { %2173 = vmatmul.mubr.msk.bf16.vlgmr.msra.gmra.mxu1 %vm1682_vm9, %v1842_v24 }
 0x55a   : > { %v1826_v26 = vpop.f32.mrf.mxu0  ;;  %1906 = vmatprep.mubr.bf16.mxu1 %v2545_v0 }
 0x55c   : > { %v2350_v27 = vpop.f32.mrf.mxu0 }
 0x55e   : > { %v1829_v28 = vpop.f32.mrf.mxu0 }
 0x55f   : > { %v1843_v29 = vpack.c.bf16 %v1829_v28, %v1826_v26 }
 0x560   : > { %v2351_v30 = vpop.f32.mrf.mxu0 }
 0x561   : > { %2174 = vmatmul.mubr.msk.bf16.gmra.mxu1 %vm1682_vm9, %v1843_v29 }
 0x562   : > { %v1834_v31 = vpop.f32.mrf.mxu0  ;;  %1916 = vmatprep.mubr.bf16.mxu1 %v2545_v0 }
 0x563   : > { %v1844_v42 = vpack.c.bf16 %v1834_v31, %v1834_v31 }
 0x564   : > { %v2354_v32 = vpop.f32.mrf.mxu0 }
 0x566   : > { %v1837_v43 = vpop.f32.mrf.mxu0 }
 0x568   : > { %v2355_v44 = vpop.f32.mrf.mxu0 }
 0x569   : > { %2175 = vmatmul.mubr.msk.bf16.gmra.mxu1 %vm1682_vm9, %v1844_v42 }
 0x5f9   : > { %v1726_v46 = vpop.f32.mrf.mxu1 }
 0x5fa   : > { %v1925_v41 = vmul.f32 %v1726_v46, %v731_v40 }
 0x5fb   : > { %v1728_v51 = vpop.f32.mrf.mxu1 }
 0x5fc   : > { %v1926_v45 = vmul.f32 %v1728_v51, %v732_v38 }
 0x5fd   : > { %v1730_v55 = vpop.f32.mrf.mxu1 }
 0x5fe   : > { %v1927_v37 = vmul.f32 %v1730_v55, %v733_v36  ;;  %v1956_v36 = vpop.permute.xlu1 %1955 }
 0x5ff   : > { %v1732_v56 = vpop.f32.mrf.mxu1 }
 0x601   : > { %v1736_v57 = vpop.f32.mrf.mxu1 }
 0x603   : > { %v1738_v59 = vpop.f32.mrf.mxu1 }
 0x604   : > { %v1930_v16 = vmul.f32 %v1738_v59, %v736_v49 }
 0x605   : > { %v1740_v60 = vpop.f32.mrf.mxu1 }
 0x606   : > { %v1931_v20 = vmul.f32 %v1740_v60, %v737_v50 }
 0x607   : > { %v1742_v63 = vpop.f32.mrf.mxu1 }
 0x608   : > { %v1932_v11 = vmul.f32 %v1742_v63, %v738_v54  ;;  %v1929_v54 = vmul.f32 %v1736_v57, %v735_v47 }
 0x609   : > { %v1746_v53 = vpop.f32.mrf.mxu1 }
 0x60a   : > { %v1933_v9 = vmul.f32 %v1746_v53, %v2832_v62  ;;  %v1928_v62 = vmul.f32 %v1732_v56, %v734_v39 }
 0x60b   : > { %v1748_v58 = vpop.f32.mrf.mxu1 }
 0x60c   : > { %v1934_v12 = vmul.f32 %v1748_v58, %v2830_v61 }
 0x60d   : > { %v1750_v1 = vpop.f32.mrf.mxu1 }
 0x60f   : > { %v1751_v2 = vpop.f32.mrf.mxu1 }
 0x619   : > { %v1898_v3 = vpop.f32.mrf.mxu1 }
 0x61a   : > { %v1935_v50 = vmul.f32 %v1925_v41, %v1898_v3 }
 0x61b   : > { %v1900_v0 = vpop.f32.mrf.mxu1 }
 0x61c   : > { %v1936_v48 = vmul.f32 %v1926_v45, %v1900_v0 }
 0x61d   : > { %v1902_v13 = vpop.f32.mrf.mxu1 }
 0x61e   : > { %v1937_v34 = vmul.f32 %v1927_v37, %v1902_v13 }
 0x61f   : > { %v1904_v4 = vpop.f32.mrf.mxu1 }
 0x620   : > { %v1938_v49 = vmul.f32 %v1928_v62, %v1904_v4  ;;  %v1946_v26 = vpack.c.bf16 %v1937_v34, %v1935_v50 }
 0x621   : > { %v1908_v5 = vpop.f32.mrf.mxu1 }
 0x622   : > { %v1939_v39 = vmul.f32 %v1929_v54, %v1908_v5  ;;  %v1947_v47 = vpack.c.bf16 %v1938_v49, %v1936_v48 }
 0x623   : > { %v1910_v6 = vpop.f32.mrf.mxu1 }
 0x624   : > { %v1940_v22 = vmul.f32 %v1930_v16, %v1910_v6 }
 0x625   : > { %v1912_v7 = vpop.f32.mrf.mxu1 }
 0x626   : > { %v1941_v61 = vmul.f32 %v1931_v20, %v1912_v7 }
 0x627   : > { %v1914_v8 = vpop.f32.mrf.mxu1 }
 0x628   : > { %v1942_v17 = vmul.f32 %v1932_v11, %v1914_v8  ;;  %v1948_v38 = vpack.c.bf16 %v1941_v61, %v1939_v39 }
 0x629   : > { %v1918_v10 = vpop.f32.mrf.mxu1 }
 0x62a   : > { %v1943_v14 = vmul.f32 %v1933_v9, %v1918_v10  ;;  %v1949_v24 = vpack.c.bf16 %v1942_v17, %v1940_v22 }
 0x62b   : > { %v1920_v15 = vpop.f32.mrf.mxu1 }
 0x62c   : > { %v1950_v18 = vpack.c.bf16 %v1943_v14, %v1943_v14  ;;  %v1944_v19 = vmul.f32 %v1934_v12, %v1920_v15 }
 0x62d   : > { %v1922_v21 = vpop.f32.mrf.mxu1 }
 0x62e   : > { %v1951_v52 = vpack.c.bf16 %v1944_v19, %v1944_v19  ;;  %v1962_v25 = vsel %vm660_vm0, %v1950_v18, 0 }
 0x62f   : > { %v1923_v23 = vpop.f32.mrf.mxu1 }
 0x630   : > { %2176 = vmatprep.subr.msk.bf16.mxu0 %vm660_vm0, %v1951_v52 }
 0x631   : > { %1978 = vmatpush1.bf16.msra.mxu0 %v1962_v25 }
 0x632   : > { %1979 = vmatprep.subr.bf16.mxu0 %v1949_v24 }
 0x635   : > { %1980 = vmatpush1.bf16.msra.mxu0 %v1948_v38 }
 0x636   : > { %1981 = vmatprep.subr.bf16.mxu0 %v1947_v47 }
 0x639   : > { %1982 = vmatpush1.bf16.msra.mxu0 %v1946_v26 }
 0x63c   : > { %2177 = vmatmul.mubr.msk.bf16.vlgmr.msra.gmra.mxu0 %vm941_vm4, %v1945_v35 }
 0x6fc   : > { %v2001_v33 = vpop.f32.mrf.mxu0 }
 0x6fd   : > { %v2002_v40 = vadd.f32 %v2001_v33, %v1956_v36 }
 0x6fe   : > { %v2003_v27 = vpop.f32.mrf.mxu0 }
 0x6ff   : > { %2008 = vst [vmem:[%s595_s27] sm:$0xff] %v2002_v40  ;;  %v2004_v28 = vadd.f32 %v2003_v27, %v1956_v36 }
 0x700   : > { %v2005_v29 = vpop.f32.mrf.mxu0 }
 0x701   : > { %2009 = vst [vmem:[%s595_s27 + $0x8] sm:$0xff] %v2004_v28 }
 0x702   : > { %v2006_v30 = vpop.f32.mrf.mxu0 }
 0x703   : > { %2496 = shalt.err (!%p2493_p3)
}
 0x704   : > { %s2497_s24 = scalar_lea.hbm %s3041_s2, 256  ;;  %s2501_s0 = scalar_lea.hbm %s3101_s19, 512 }
 0x705   : > { %p2498_p4 = scmp.ne.s32.totalorder %s3041_s2, %s2497_s24  ;;  %p2502_p9 = scmp.lt.s32.totalorder %s3041_s2, %s3101_s19 }
 0x706   : > { %p2503_p10 = scmp.lt.s32.totalorder %s2501_s0, %s2497_s24 }
 0x707   : > { %p2499_p7 = pnand %p2498_p4, %p2688_p5 }
 0x708   : > { %p2504_p11 = por %p2503_p10, %p2502_p9 }
 0x709   : > { %p2500_p8 = pneg %p2499_p7 }
 0x70b   : > { %p2505_p12 = pnand %p2504_p11, %p2500_p8 }
 0x70d   : > { %2508 = shalt.err (!%p2505_p12)
}
 0x70e   : > { %2359 = dma.vmem_to_hbm [thread:$0]  (%p2688_p5), %s3043_s29, 256, %s3041_s2, %s2011_s1  }
 0x70f PF: > { %s3131_s21 = sld [smem:[#allocation7_spill]] }
 0x710   : > { %s3132_s23 = sld [smem:[#allocation5_spill]] }
 0x715   : > { %p2365_p13 = scmp.ge.s32.totalorder %s3131_s21, 2 }
 0x716   : > { %s2037_s22 = sand.u32 1, %s3132_s23  }
 0x717   : > { %p2362_p0 = pnand %p2365_p13, %p2692_p6  ;;  %s2038_s4 = scalar_lea.sflag [#allocation3], %s2037_s22 }
 0x719   : > { %p2363_p1 = pneg %p2362_p0 }
 0x71b   : > { %2526 = dma.done.wait (%p2363_p1), %s2038_s4, 256  }
 0x71c   : > { %2528 = vsyncadd (%p2363_p1), %s2038_s4, 4294967040  ;;  %s3134_s21 = sld [smem:[#allocation8_spill]]  ;;  %s3137_s0 = smov %s2535_s30 }
 0x71d   : > { %s3135_s24 = sld [smem:[#allocation6_spill]] }
 0x71e   : > { %s3136_s20 = sld [smem:[#allocation9_spill]] }
 0x722   : > { %p29_p2 = scmp.ge.s32.totalorder %s3134_s21, 4  }
 0x723   : > { %s3138_s30 = smov %s3135_s24 }
 0x724   :  { %31 = sbr.rel (!%p29_p2) target bundleno = 9 (0x9), region = 131 }
 0x729   :  { %2043 = vsyncpa [#allocation3], 1 }
 0x72a   :  { %2045 = vsyncpa [#allocation3 + $0x1], 1 }

</bundles_post_ra>
